<compile_context>
chip_gen: v6e
topology: v6e:2x2x1
jax: 0.10.0
libtpu: 0.0.40
codegen_flags: <defaults>
</compile_context>

<pallas_src>
import functools

import jax
import jax.numpy as jnp
from jax.experimental import pallas as pl
from jax.experimental.pallas import tpu as pltpu

BN_EPS = 1e-5
LANE = 128
ROW_ALIGN = 32          # sublane-safe row alignment for f32 / bf16 / int8 blocks


def _round_up(x, m):
    return (x + m - 1) // m * m


def _vmem_budget_bytes():
    """Per-generation VMEM budget (v5e/v6e: 128 MiB physical, v7x: 64 MiB)."""
    try:
        cap = int(pltpu.get_tpu_info().vmem_capacity_bytes)
    except Exception:
        cap = 64 * 1024 * 1024
    return max(16 * 1024 * 1024, min(cap * 3 // 4, 100 * 1024 * 1024))


# ---------------------------------------------------------------------------
# Kernel 1: conv-as-GEMM (single K step, weight VMEM-resident) + per-M-tile
# centered BN partial statistics.  grid = (Gm,), M axis "parallel" (megacore).
# ---------------------------------------------------------------------------
def _conv_gemm_stats_kernel(x_ref, w_ref, y_ref, stats_ref, *, m_total, tm):
    i = pl.program_id(0)

    # bf16 x bf16 -> f32 on the MXU.  Whole reduced dim (Cin*K*K) in one shot.
    y = jnp.dot(x_ref[...], w_ref[...], preferred_element_type=jnp.float32)
    y_ref[...] = y.astype(y_ref.dtype)          # bf16 intermediate to HBM

    # Per-tile centered partials (sum, sum((y - tile_mean)^2)) from the f32
    # result, with zero-padded rows masked out.  Chan combine happens in JAX,
    # so this grid axis stays "parallel" and variance avoids E[y^2]-E[y]^2
    # cancellation.
    row = jax.lax.broadcasted_iota(jnp.int32, (tm, 1), 0) + i * tm
    valid = row < m_total
    cnt = jnp.minimum(m_total - i * tm, tm).astype(jnp.float32)
    s = jnp.sum(jnp.where(valid, y, 0.0), axis=0, keepdims=True)
    mu = s / cnt
    d = jnp.where(valid, y - mu, 0.0)
    q = jnp.sum(d * d, axis=0, keepdims=True)
    stats_ref[0:1, :] = s
    stats_ref[1:2, :] = q


# ---------------------------------------------------------------------------
# Kernel 2: fused BN affine + ReLU epilogue, applied in place on bf16 y.
# ---------------------------------------------------------------------------
def _bn_relu_kernel(y_ref, scale_ref, shift_ref, o_ref):
    y = y_ref[...].astype(jnp.float32)
    o_ref[...] = jnp.maximum(
        y * scale_ref[...] + shift_ref[...], 0.0).astype(o_ref.dtype)


def _im2col_nhwc(x, K):
    """NHWC (already compute dtype) -> (N*H*W, Cin*K*K), stride=1, pad=K//2.
    Column ordering (c, ki, kj) matches torch weight.reshape(Cout, Cin*K*K)."""
    N, H, W, C = x.shape
    p = K // 2
    xp = jnp.pad(x, ((0, 0), (p, p), (p, p), (0, 0)))
    taps = [xp[:, i:i + H, j:j + W, :] for i in range(K) for j in range(K)]
    cols = jnp.stack(taps, axis=-1)                   # (N, H, W, C, K*K)
    return cols.reshape(N * H * W, C * K * K)


def conv_bn_relu(x_nhwc, weight, gamma, beta, *, compute_dtype=jnp.bfloat16,
                 block_m=1024, block_m_pass2=4096):
    """Conv2d(KxK, stride=1, pad=K//2, bias=False) + training-mode BN + ReLU.
    x_nhwc: (N, H, W, Cin); weight: (Cout, Cin, K, K) (PyTorch OIHW).
    Returns (N, H, W, Cout) in compute_dtype (bf16)."""
    N, H, W, Cin = x_nhwc.shape
    Cout, _, K, _ = weight.shape

    # TODO(synk): fuse the im2col (and the upstream upsample/concat) into the
    # kernel as a 9-tap accumulation over shifted NHWC row-bands so the
    # 9x-expanded X_col never touches HBM.
    xcol = _im2col_nhwc(x_nhwc.astype(compute_dtype), K)   # single bf16 staging
    M, Kd = xcol.shape

    Cp = _round_up(Cout, LANE)                # lane-dense output / weight cols
    budget = _vmem_budget_bytes()

    # Size tm against the VMEM budget (double-buffered lhs/out blocks, resident
    # weight, f32 temporaries); keep Gm >= 2 so v7x megacore has work per core.
    per_row = 2 * (2 * Kd) + 2 * (2 * Cp) + 8 * Cp          # bytes per tm row
    fixed = 2 * Kd * Cp + (2 << 20)
    tm = min(block_m, max(ROW_ALIGN, (budget - fixed) // per_row))
    tm = min(tm, _round_up(pl.cdiv(M, 2), ROW_ALIGN))
    tm = max(ROW_ALIGN, (tm // ROW_ALIGN) * ROW_ALIGN)
    Mp = _round_up(M, tm)
    Gm = Mp // tm

    xcol_p = jnp.pad(xcol, ((0, Mp - M), (0, 0)))           # zero rows only
    w_p = jnp.pad(weight.reshape(Cout, Kd).T.astype(compute_dtype),
                  ((0, 0), (0, Cp - Cout)))                 # (Kd, Cp), tiny

    kern = functools.partial(_conv_gemm_stats_kernel, m_total=M, tm=tm)
    y, stats = pl.pallas_call(
        kern,
        out_shape=(jax.ShapeDtypeStruct((Mp, Cp), compute_dtype),
                   jax.ShapeDtypeStruct((Gm, 2, Cp), jnp.float32)),
        grid=(Gm,),
        in_specs=[
            pl.BlockSpec((tm, Kd), lambda i: (i, 0)),
            pl.BlockSpec((Kd, Cp), lambda i: (0, 0)),   # grid-invariant: one DMA
        ],
        out_specs=(
            pl.BlockSpec((tm, Cp), lambda i: (i, 0)),
            pl.BlockSpec((None, 2, Cp), lambda i: (i, 0, 0)),
        ),
        compiler_params=pltpu.CompilerParams(
            dimension_semantics=("parallel",),
            vmem_limit_bytes=budget),
    )(xcol_p, w_p)

    # Chan parallel-variance combine + fused scale/shift, tiny f32 math in JAX.
    r = jnp.minimum(M - jnp.arange(Gm) * tm, tm).astype(jnp.float32)  # (Gm,)
    s = stats[:, 0, :]
    q = stats[:, 1, :]
    mean = jnp.sum(s, axis=0) / M
    mu_i = s / r[:, None]
    var = (jnp.sum(q, axis=0)
           + jnp.sum(r[:, None] * (mu_i - mean) ** 2, axis=0)) / M
    var = jnp.maximum(var, 0.0)                          # biased batch variance

    gamma_p = jnp.pad(gamma.astype(jnp.float32), (0, Cp - Cout))
    beta_p = jnp.pad(beta.astype(jnp.float32), (0, Cp - Cout))
    scale = gamma_p * jax.lax.rsqrt(var + BN_EPS)
    shift = beta_p - mean * scale

    # Pass-2 tile: as large a multiple of tm as divides Mp (>= 2 blocks when
    # possible so the parallel axis still feeds both v7x cores).
    j = max(1, min(Gm, block_m_pass2 // tm))
    while j > 1 and (Gm % j != 0 or Gm // j < 2):
        j -= 1
    tm2 = tm * j

    out = pl.pallas_call(
        _bn_relu_kernel,
        out_shape=jax.ShapeDtypeStruct((Mp, Cp), compute_dtype),
        grid=(Mp // tm2,),
        in_specs=[
            pl.BlockSpec((tm2, Cp), lambda i: (i, 0)),
            pl.BlockSpec((1, Cp), lambda i: (0, 0)),     # grid-invariant blocks
            pl.BlockSpec((1, Cp), lambda i: (0, 0)),
        ],
        out_specs=pl.BlockSpec((tm2, Cp), lambda i: (i, 0)),
        input_output_aliases={0: 0},                     # BN+ReLU in place on y
        compiler_params=pltpu.CompilerParams(
            dimension_semantics=("parallel",),
            vmem_limit_bytes=budget),
    )(y, scale.reshape(1, Cp), shift.reshape(1, Cp))

    return out[:M, :Cout].reshape(N, H, W, Cout)


def _upsample2x_concat_nhwc(x, skip, dtype):
    """Nearest 2x upsample of NCHW x, concat NCHW skip on channels, emit one
    bf16 NHWC tensor (single staging write, no separate f32 copies)."""
    N, C, H, W = x.shape
    xu = jnp.broadcast_to(x[:, :, :, None, :, None],
                          (N, C, H, 2, W, 2)).reshape(N, C, 2 * H, 2 * W)
    parts = [jnp.transpose(xu, (0, 2, 3, 1))]
    if skip is not None:
        parts.append(jnp.transpose(skip, (0, 2, 3, 1)))
    return jnp.concatenate(parts, axis=-1).astype(dtype)


def decoder_block(x, skip, w1, g1, b1, w2, g2, b2, *,
                  compute_dtype=jnp.bfloat16):
    """DecoderBlock forward. x: (N, Cx, H, W), skip: (N, Cs, 2H, 2W) or None.
    Returns (N, Cout, 2H, 2W) float32."""
    h = _upsample2x_concat_nhwc(x, skip, compute_dtype)     # NHWC bf16
    h = conv_bn_relu(h, w1, g1, b1, compute_dtype=compute_dtype)
    h = conv_bn_relu(h, w2, g2, b2, compute_dtype=compute_dtype)
    return jnp.transpose(h, (0, 3, 1, 2)).astype(jnp.float32)   # NCHW boundary


# ---------------------------------------------------------------------------
# Pure-JAX reference (PyTorch semantics). cast_dtype=bf16 mirrors the kernel's
# bf16 MXU operands and bf16 intermediates for a tight structural check.
# ---------------------------------------------------------------------------
def reference_decoder_block(x, skip, w1, g1, b1, w2, g2, b2,
                            cast_dtype=jnp.float32):
    prec = (jax.lax.Precision.HIGHEST if cast_dtype == jnp.float32
            else jax.lax.Precision.DEFAULT)
    mirror_lowp = cast_dtype != jnp.float32

    def conv_bn_relu_ref(x, w, g, b):
        y = jax.lax.conv_general_dilated(
            x.astype(cast_dtype), w.astype(cast_dtype),
            window_strides=(1, 1), padding=[(1, 1), (1, 1)],
            dimension_numbers=("NCHW", "OIHW", "NCHW"),
            preferred_element_type=jnp.float32, precision=prec)
        if mirror_lowp:                      # kernel stores conv output in bf16
            y = y.astype(cast_dtype).astype(jnp.float32)
        mean = jnp.mean(y, axis=(0, 2, 3), keepdims=True)
        var = jnp.mean((y - mean) ** 2, axis=(0, 2, 3), keepdims=True)
        out = (y - mean) * jax.lax.rsqrt(var + BN_EPS)
        out = out * g.reshape(1, -1, 1, 1) + b.reshape(1, -1, 1, 1)
        out = jnp.maximum(out, 0.0)
        if mirror_lowp:                      # kernel keeps activations in bf16
            out = out.astype(cast_dtype).astype(jnp.float32)
        return out

    x = jnp.repeat(jnp.repeat(x, 2, axis=2), 2, axis=3)
    if skip is not None:
        x = jnp.concatenate([x, skip], axis=1)
    x = conv_bn_relu_ref(x, w1, g1, b1)
    x = conv_bn_relu_ref(x, w2, g2, b2)
    return x


if __name__ == "__main__":
    # Small shapes: x (2,4,8,8), skip (2,4,16,16) -> concat channels = 8,
    # DecoderBlock(in_channels=8, out_channels=8), output (2,8,16,16).
    N, Cx, Cs, H, W = 2, 4, 4, 8, 8
    Cin, Cout = Cx + Cs, 8

    key = jax.random.PRNGKey(0)
    kx, ks, kw1, kw2, kg1, kb1, kg2, kb2 = jax.random.split(key, 8)
    x = jax.random.normal(kx, (N, Cx, H, W), dtype=jnp.float32)
    skip = jax.random.normal(ks, (N, Cs, 2 * H, 2 * W), dtype=jnp.float32)
    w1 = jax.random.normal(kw1, (Cout, Cin, 3, 3), dtype=jnp.float32) * 0.1
    w2 = jax.random.normal(kw2, (Cout, Cout, 3, 3), dtype=jnp.float32) * 0.1
    g1 = 1.0 + 0.1 * jax.random.normal(kg1, (Cout,), dtype=jnp.float32)
    b1 = 0.1 * jax.random.normal(kb1, (Cout,), dtype=jnp.float32)
    g2 = 1.0 + 0.1 * jax.random.normal(kg2, (Cout,), dtype=jnp.float32)
    b2 = 0.1 * jax.random.normal(kb2, (Cout,), dtype=jnp.float32)

    fwd = jax.jit(decoder_block)
    out = jax.block_until_ready(fwd(x, skip, w1, g1, b1, w2, g2, b2))
    assert out.shape == (N, Cout, 2 * H, 2 * W), out.shape

    # Structural check vs a reference with the same bf16 operand/intermediate
    # numerics (the tight check).
    ref_bf16 = reference_decoder_block(x, skip, w1, g1, b1, w2, g2, b2,
                                       cast_dtype=jnp.bfloat16)
    err_bf16 = float(jnp.max(jnp.abs(out - ref_bf16)))
    assert jnp.allclose(out, ref_bf16, rtol=5e-2, atol=5e-2), err_bf16

    # Semantics sanity check vs the full-f32 PyTorch-style forward (bf16
    # quantization of operands/intermediates is the only numerics difference).
    ref_f32 = reference_decoder_block(x, skip, w1, g1, b1, w2, g2, b2,
                                      cast_dtype=jnp.float32)
    err_f32 = float(jnp.max(jnp.abs(out - ref_f32)))
    assert jnp.allclose(out, ref_f32, rtol=1.5e-1, atol=1.5e-1), err_f32

    print("KERNEL_OK")
</pallas_src>

<mosaic_0001>
module attributes {stable_mosaic.version = 11 : i64} {
  func.func @_conv_gemm_stats_kernel(%arg0: i32, %arg1: memref<256x72xbf16, #tpu.memory_space<vmem>>, %arg2: memref<72x128xbf16, #tpu.memory_space<vmem>>, %arg3: memref<256x128xbf16, #tpu.memory_space<vmem>>, %arg4: memref<1x2x128xf32, #tpu.memory_space<vmem>>) attributes {dimension_semantics = [#tpu.dimension_semantics<parallel>], iteration_bounds = array<i64: 2>, scalar_prefetch = 0 : i64, scratch_operands = 0 : i64, tpu.core_type = #tpu.core_type<tc>, window_params = [{transform_indices = @transform_0, window_bounds = array<i64: 256, 72>}, {pipeline_mode = #tpu.pipeline_mode<synchronous>, transform_indices = @transform_1, window_bounds = array<i64: 72, 128>}, {transform_indices = @transform_2, window_bounds = array<i64: 256, 128>}, {transform_indices = @transform_3, window_bounds = array<i64: 1, 2, 128>}]} {
    %c0 = arith.constant 0 : index
    %c0_0 = arith.constant 0 : index
    %0 = vector.load %arg1[%c0, %c0_0] : memref<256x72xbf16, #tpu.memory_space<vmem>>, vector<256x72xbf16>
    %c0_1 = arith.constant 0 : index
    %c0_2 = arith.constant 0 : index
    %1 = vector.load %arg2[%c0_1, %c0_2] : memref<72x128xbf16, #tpu.memory_space<vmem>>, vector<72x128xbf16>
    %cst = arith.constant dense<0.000000e+00> : vector<256x128xf32>
    %2 = tpu.matmul %0, %1, %cst {dimension_numbers = #tpu.dot_dimension_numbers<[1], [0], [0], [1], [0, 0, 1, 1], [], []>} : vector<256x72xbf16>, vector<72x128xbf16>, vector<256x128xf32> -> vector<256x128xf32>
    %3 = arith.truncf %2 : vector<256x128xf32> to vector<256x128xbf16>
    %c0_3 = arith.constant 0 : index
    %c0_4 = arith.constant 0 : index
    %4 = vector.load %arg3[%c0_3, %c0_4] : memref<256x128xbf16, #tpu.memory_space<vmem>>, vector<256x128xbf16>
    tpu.vector_store %arg3[%c0_3, %c0_4], %3 {strides = array<i32>} : memref<256x128xbf16, #tpu.memory_space<vmem>>, vector<256x128xbf16>,
    %5 = tpu.iota {dimensions = array<i32: 0>} : vector<256x1xi32>
    %c256_i32 = arith.constant 256 : i32
    %6 = arith.muli %arg0, %c256_i32 : i32
    %7 = vector.broadcast %6 : i32 to vector<256x1xi32>
    %8 = arith.addi %5, %7 : vector<256x1xi32>
    %c512_i32 = arith.constant 512 : i32
    %9 = vector.broadcast %c512_i32 : i32 to vector<256x1xi32>
    %10 = arith.cmpi slt, %8, %9 : vector<256x1xi32>
    %c256_i32_5 = arith.constant 256 : i32
    %11 = arith.muli %arg0, %c256_i32_5 : i32
    %c512_i32_6 = arith.constant 512 : i32
    %12 = arith.subi %c512_i32_6, %11 : i32
    %c256_i32_7 = arith.constant 256 : i32
    %13 = arith.minsi %12, %c256_i32_7 : i32
    %14 = arith.sitofp %13 : i32 to f32
    %cst_8 = arith.constant 0.000000e+00 : f32
    %15 = vector.shape_cast %10 : vector<256x1xi1> to vector<256x1xi1>
    %16 = vector.broadcast %15 : vector<256x1xi1> to vector<256x128xi1>
    %17 = vector.broadcast %cst_8 : f32 to vector<256x128xf32>
    %18 = arith.select %16, %2, %17 : vector<256x128xi1>, vector<256x128xf32>
    %cst_9 = arith.constant dense<0.000000e+00> : vector<128xf32>
    %19 = vector.multi_reduction <add>, %18, %cst_9 [0] : vector<256x128xf32> to vector<128xf32>
    %20 = vector.shape_cast %19 : vector<128xf32> to vector<1x128xf32>
    %21 = vector.broadcast %14 : f32 to vector<1x128xf32>
    %22 = arith.divf %20, %21 : vector<1x128xf32>
    %23 = vector.broadcast %22 : vector<1x128xf32> to vector<256x128xf32>
    %24 = arith.subf %2, %23 : vector<256x128xf32>
    %cst_10 = arith.constant 0.000000e+00 : f32
    %25 = vector.shape_cast %10 : vector<256x1xi1> to vector<256x1xi1>
    %26 = vector.broadcast %25 : vector<256x1xi1> to vector<256x128xi1>
    %27 = vector.broadcast %cst_10 : f32 to vector<256x128xf32>
    %28 = arith.select %26, %24, %27 : vector<256x128xi1>, vector<256x128xf32>
    %29 = arith.mulf %28, %28 : vector<256x128xf32>
    %cst_11 = arith.constant dense<0.000000e+00> : vector<128xf32>
    %30 = vector.multi_reduction <add>, %29, %cst_11 [0] : vector<256x128xf32> to vector<128xf32>
    %31 = vector.shape_cast %30 : vector<128xf32> to vector<1x128xf32>
    %c0_12 = arith.constant 0 : index
    %c0_13 = arith.constant 0 : index
    %c0_14 = arith.constant 0 : index
    %32 = vector.load %arg4[%c0_12, %c0_13, %c0_14] : memref<1x2x128xf32, #tpu.memory_space<vmem>>, vector<1x1x128xf32>
    %33 = vector.shape_cast %32 : vector<1x1x128xf32> to vector<1x128xf32>
    %34 = vector.shape_cast %20 : vector<1x128xf32> to vector<1x1x128xf32>
    tpu.vector_store %arg4[%c0_12, %c0_13, %c0_14], %34 {strides = array<i32>} : memref<1x2x128xf32, #tpu.memory_space<vmem>>, vector<1x1x128xf32>,
    %c0_15 = arith.constant 0 : index
    %c1 = arith.constant 1 : index
    %c0_16 = arith.constant 0 : index
    %35 = vector.load %arg4[%c0_15, %c1, %c0_16] : memref<1x2x128xf32, #tpu.memory_space<vmem>>, vector<1x1x128xf32>
    %36 = vector.shape_cast %35 : vector<1x1x128xf32> to vector<1x128xf32>
    %37 = vector.shape_cast %31 : vector<1x128xf32> to vector<1x1x128xf32>
    tpu.vector_store %arg4[%c0_15, %c1, %c0_16], %37 {strides = array<i32>} : memref<1x2x128xf32, #tpu.memory_space<vmem>>, vector<1x1x128xf32>,
    return
  }
  func.func @transform_0(%arg0: i32) -> (i32, i32) {
    %c0_i32 = arith.constant 0 : i32
    %c0_i32_0 = arith.constant 0 : i32
    return %arg0, %c0_i32 : i32, i32
  }
  func.func @transform_1(%arg0: i32) -> (i32, i32) {
    %c0_i32 = arith.constant 0 : i32
    %c0_i32_0 = arith.constant 0 : i32
    %c0_i32_1 = arith.constant 0 : i32
    return %c0_i32, %c0_i32_0 : i32, i32
  }
  func.func @transform_2(%arg0: i32) -> (i32, i32) {
    %c0_i32 = arith.constant 0 : i32
    %c0_i32_0 = arith.constant 0 : i32
    return %arg0, %c0_i32 : i32, i32
  }
  func.func @transform_3(%arg0: i32) -> (i32, i32, i32) {
    %c0_i32 = arith.constant 0 : i32
    %c0_i32_0 = arith.constant 0 : i32
    %c0_i32_1 = arith.constant 0 : i32
    return %arg0, %c0_i32, %c0_i32_0 : i32, i32, i32
  }
}

module attributes {stable_mosaic.version = 11 : i64} {
  func.func @_bn_relu_kernel(%arg0: i32, %arg1: memref<256x128xbf16, #tpu.memory_space<vmem>>, %arg2: memref<1x128xf32, #tpu.memory_space<vmem>>, %arg3: memref<1x128xf32, #tpu.memory_space<vmem>>, %arg4: memref<256x128xbf16, #tpu.memory_space<vmem>>) attributes {dimension_semantics = [#tpu.dimension_semantics<parallel>], iteration_bounds = array<i64: 2>, scalar_prefetch = 0 : i64, scratch_operands = 0 : i64, tpu.core_type = #tpu.core_type<tc>, window_params = [{transform_indices = @transform_0, window_bounds = array<i64: 256, 128>}, {pipeline_mode = #tpu.pipeline_mode<synchronous>, transform_indices = @transform_1, window_bounds = array<i64: 1, 128>}, {pipeline_mode = #tpu.pipeline_mode<synchronous>, transform_indices = @transform_2, window_bounds = array<i64: 1, 128>}, {transform_indices = @transform_3, window_bounds = array<i64: 256, 128>}]} {
    %c0 = arith.constant 0 : index
    %c0_0 = arith.constant 0 : index
    %0 = vector.load %arg1[%c0, %c0_0] : memref<256x128xbf16, #tpu.memory_space<vmem>>, vector<256x128xbf16>
    %1 = arith.extf %0 : vector<256x128xbf16> to vector<256x128xf32>
    %c0_1 = arith.constant 0 : index
    %c0_2 = arith.constant 0 : index
    %2 = vector.load %arg2[%c0_1, %c0_2] : memref<1x128xf32, #tpu.memory_space<vmem>>, vector<1x128xf32>
    %3 = vector.broadcast %2 : vector<1x128xf32> to vector<256x128xf32>
    %4 = arith.mulf %1, %3 : vector<256x128xf32>
    %c0_3 = arith.constant 0 : index
    %c0_4 = arith.constant 0 : index
    %5 = vector.load %arg3[%c0_3, %c0_4] : memref<1x128xf32, #tpu.memory_space<vmem>>, vector<1x128xf32>
    %6 = vector.broadcast %5 : vector<1x128xf32> to vector<256x128xf32>
    %7 = arith.addf %4, %6 : vector<256x128xf32>
    %cst = arith.constant 0.000000e+00 : f32
    %8 = vector.broadcast %cst : f32 to vector<256x128xf32>
    %9 = arith.maximumf %7, %8 : vector<256x128xf32>
    %10 = arith.truncf %9 : vector<256x128xf32> to vector<256x128xbf16>
    %c0_5 = arith.constant 0 : index
    %c0_6 = arith.constant 0 : index
    %11 = vector.load %arg4[%c0_5, %c0_6] : memref<256x128xbf16, #tpu.memory_space<vmem>>, vector<256x128xbf16>
    tpu.vector_store %arg4[%c0_5, %c0_6], %10 {strides = array<i32>} : memref<256x128xbf16, #tpu.memory_space<vmem>>, vector<256x128xbf16>,
    return
  }
  func.func @transform_0(%arg0: i32) -> (i32, i32) {
    %c0_i32 = arith.constant 0 : i32
    %c0_i32_0 = arith.constant 0 : i32
    return %arg0, %c0_i32 : i32, i32
  }
  func.func @transform_1(%arg0: i32) -> (i32, i32) {
    %c0_i32 = arith.constant 0 : i32
    %c0_i32_0 = arith.constant 0 : i32
    %c0_i32_1 = arith.constant 0 : i32
    return %c0_i32, %c0_i32_0 : i32, i32
  }
  func.func @transform_2(%arg0: i32) -> (i32, i32) {
    %c0_i32 = arith.constant 0 : i32
    %c0_i32_0 = arith.constant 0 : i32
    %c0_i32_1 = arith.constant 0 : i32
    return %c0_i32, %c0_i32_0 : i32, i32
  }
  func.func @transform_3(%arg0: i32) -> (i32, i32) {
    %c0_i32 = arith.constant 0 : i32
    %c0_i32_0 = arith.constant 0 : i32
    return %arg0, %c0_i32 : i32, i32
  }
}

</mosaic_0001>

<bundles_post_ra>
// kernel: decoder_block.5
= control target key start
LH: loop header
LB: loop body
LE: loop exit
PB: predicated region body
PF: predicated region fallthrough
CT: control target
= control target key end

     0   :  { %s851_s12 = smov 0   ;;  %s993_s0 = inlined_call_operand.vmem [shape: bf16[512,128], index: 0, kind: input, shape index: {}, may-alias: {0,3}]   ;;  %s994_s1 = inlined_call_operand.vmem [shape: f32[1,128], index: 1, kind: input, shape index: {}]   ;;  %s995_s2 = inlined_call_operand.vmem [shape: f32[1,128], index: 2, kind: input, shape index: {}]   ;;  %s996_s3 = inlined_call_operand.vmem [shape: bf16[512,128], index: 3, kind: output, shape index: {}, may-alias: {0,3}]  }
   0x1 LB: > { %s564_s13 = sadd.s32 4294967295, %s829_s12   ;;  %p568_p0 = scmp.ge.s32.totalorder %s829_s12, 1  ;;  %s829_s12 = sphi %s851_s12, %s13_s12  }
   0x2   : > { %p138_p1 = scmp.lt.s32.totalorder %s829_s12, 3 }
   0x4   : > { %p139_p2 = pnand %p568_p0, %p138_p1 }
   0x5   : > { %s569_s14 = sshll.u32 (!%p139_p2), %s564_s13, 5 }
   0x6   : > { %142 = sbr.rel (%p139_p2) target bundleno = 55 (0x37), region = 32  ;;  %p163_p3 = scmp.lt.s32.totalorder (!%p139_p2), %s569_s14, 63 }
   0xb   : > { %s998_s14 = smov (!%p163_p3, %s569_s14), 63  ;;  %v573_v40 = vld [vmem:[%s994_s1] ss:$0 sm:$0xff] }
   0xc   : > { %s570_s15 = sshll.u32 %s998_s14, 2 }
   0xd   : > { %s867_s18 = scalar_lea.vmem %s993_s0, %s570_s15  ;;  %s934_s25 = scalar_lea.vmem %s996_s3, %s570_s15 }
   0xe   : > { %v642_v0 = vld [vmem:[%s867_s18] sm:$0xff]   ;;  %v785_v1 = vld [vmem:[%s867_s18 + $0x8] sm:$0xff]   ;;  %v786_v2 = vld [vmem:[%s867_s18 + $0x10] sm:$0xff]  }
   0xf   : > { %v643_v3 = vunpack.c.l.bf16 %v642_v0  ;;  %v644_v4 = vunpack.c.h.bf16 %v642_v0  ;;  %v647_v5 = vunpack.c.l.bf16 %v785_v1  ;;  %v648_v6 = vunpack.c.h.bf16 %v785_v1  ;;  %v787_v7 = vld [vmem:[%s867_s18 + $0x18] sm:$0xff]   ;;  %v788_v8 = vld [vmem:[%s867_s18 + $0x20] sm:$0xff]   ;;  %v789_v9 = vld [vmem:[%s867_s18 + $0x28] sm:$0xff]  }
  0x10   : > { %v651_v10 = vunpack.c.l.bf16 %v786_v2  ;;  %v652_v11 = vunpack.c.h.bf16 %v786_v2  ;;  %v655_v12 = vunpack.c.l.bf16 %v787_v7  ;;  %v656_v13 = vunpack.c.h.bf16 %v787_v7  ;;  %v790_v14 = vld [vmem:[%s867_s18 + $0x30] sm:$0xff]   ;;  %v791_v15 = vld [vmem:[%s867_s18 + $0x38] sm:$0xff]   ;;  %v792_v16 = vld [vmem:[%s867_s18 + $0x40] sm:$0xff]  }
  0x11   : > { %v659_v17 = vunpack.c.l.bf16 %v788_v8  ;;  %v660_v18 = vunpack.c.h.bf16 %v788_v8  ;;  %v663_v19 = vunpack.c.l.bf16 %v789_v9  ;;  %v664_v20 = vunpack.c.h.bf16 %v789_v9  ;;  %v793_v21 = vld [vmem:[%s867_s18 + $0x48] sm:$0xff]   ;;  %v794_v22 = vld [vmem:[%s867_s18 + $0x50] sm:$0xff]   ;;  %v795_v23 = vld [vmem:[%s867_s18 + $0x58] sm:$0xff]  }
  0x12   : > { %v667_v24 = vunpack.c.l.bf16 %v790_v14  ;;  %v668_v25 = vunpack.c.h.bf16 %v790_v14  ;;  %v671_v26 = vunpack.c.l.bf16 %v791_v15  ;;  %v672_v27 = vunpack.c.h.bf16 %v791_v15  ;;  %v796_v28 = vld [vmem:[%s867_s18 + $0x60] sm:$0xff]   ;;  %v797_v29 = vld [vmem:[%s867_s18 + $0x68] sm:$0xff]   ;;  %v798_v34 = vld [vmem:[%s867_s18 + $0x70] sm:$0xff]  }
  0x13   : > { %v675_v30 = vunpack.c.l.bf16 %v792_v16  ;;  %v676_v31 = vunpack.c.h.bf16 %v792_v16  ;;  %v679_v32 = vunpack.c.l.bf16 %v793_v21  ;;  %v680_v33 = vunpack.c.h.bf16 %v793_v21  ;;  %v799_v35 = vld [vmem:[%s867_s18 + $0x78] sm:$0xff]   ;;  %v903_v9 = vld [vmem:[%s995_s2] ss:$0 sm:$0xff] }
  0x14   : > { %v683_v36 = vunpack.c.l.bf16 %v794_v22  ;;  %v684_v37 = vunpack.c.h.bf16 %v794_v22  ;;  %v687_v38 = vunpack.c.l.bf16 %v795_v23  ;;  %v688_v39 = vunpack.c.h.bf16 %v795_v23 }
  0x15   : > { %v691_v41 = vunpack.c.l.bf16 %v796_v28  ;;  %v692_v42 = vunpack.c.h.bf16 %v796_v28  ;;  %v695_v43 = vunpack.c.l.bf16 %v797_v29  ;;  %v696_v44 = vunpack.c.h.bf16 %v797_v29 }
  0x16   : > { %v699_v45 = vunpack.c.l.bf16 %v798_v34  ;;  %v700_v46 = vunpack.c.h.bf16 %v798_v34  ;;  %v703_v47 = vunpack.c.l.bf16 %v799_v35  ;;  %v704_v48 = vunpack.c.h.bf16 %v799_v35 }
  0x17   : > { %v245_v49 = vmul.f32 %v643_v3, %v573_v40  ;;  %v246_v50 = vmul.f32 %v644_v4, %v573_v40  ;;  %v247_v51 = vmul.f32 %v647_v5, %v573_v40  ;;  %v248_v52 = vmul.f32 %v648_v6, %v573_v40 }
  0x18   : > { %v249_v53 = vmul.f32 %v651_v10, %v573_v40  ;;  %v250_v54 = vmul.f32 %v652_v11, %v573_v40  ;;  %v251_v55 = vmul.f32 %v655_v12, %v573_v40  ;;  %v252_v56 = vmul.f32 %v656_v13, %v573_v40 }
  0x19   : > { %v253_v57 = vmul.f32 %v659_v17, %v573_v40  ;;  %v254_v58 = vmul.f32 %v660_v18, %v573_v40  ;;  %v255_v59 = vmul.f32 %v663_v19, %v573_v40  ;;  %v256_v60 = vmul.f32 %v664_v20, %v573_v40 }
  0x1a   : > { %v257_v61 = vmul.f32 %v667_v24, %v573_v40  ;;  %v258_v62 = vmul.f32 %v668_v25, %v573_v40  ;;  %v259_v63 = vmul.f32 %v671_v26, %v573_v40  ;;  %v260_v0 = vmul.f32 %v672_v27, %v573_v40 }
  0x1b   : > { %v261_v1 = vmul.f32 %v675_v30, %v573_v40  ;;  %v262_v2 = vmul.f32 %v676_v31, %v573_v40  ;;  %v888_v7 = vmul.f32 %v679_v32, %v573_v40  ;;  %v890_v3 = vmul.f32 %v680_v33, %v573_v40 }
  0x1c   : > { %v892_v4 = vmul.f32 %v683_v36, %v573_v40  ;;  %v894_v5 = vmul.f32 %v684_v37, %v573_v40  ;;  %v896_v6 = vmul.f32 %v687_v38, %v573_v40  ;;  %v898_v8 = vmul.f32 %v688_v39, %v573_v40 }
  0x1d   : > { %v905_v10 = vmul.f32 %v691_v41, %v573_v40  ;;  %v907_v11 = vmul.f32 %v692_v42, %v573_v40  ;;  %v909_v12 = vmul.f32 %v695_v43, %v573_v40  ;;  %v911_v13 = vmul.f32 %v696_v44, %v573_v40 }
  0x1e   : > { %v913_v14 = vmul.f32 %v699_v45, %v573_v40  ;;  %v915_v15 = vmul.f32 %v700_v46, %v573_v40  ;;  %v917_v16 = vmul.f32 %v703_v47, %v573_v40  ;;  %v919_v17 = vmul.f32 %v704_v48, %v573_v40 }
  0x1f   : > { %v284_v18 = vadd.f32 %v903_v9, %v245_v49  ;;  %v285_v19 = vadd.f32 %v903_v9, %v246_v50  ;;  %v286_v20 = vadd.f32 %v903_v9, %v247_v51  ;;  %v287_v21 = vadd.f32 %v903_v9, %v248_v52 }
  0x20   : > { %v288_v22 = vadd.f32 %v903_v9, %v249_v53  ;;  %v289_v23 = vadd.f32 %v903_v9, %v250_v54  ;;  %v290_v24 = vadd.f32 %v903_v9, %v251_v55  ;;  %v291_v25 = vadd.f32 %v903_v9, %v252_v56 }
  0x21   : > { %v316_v26 = vmax.f32 %v284_v18, 0.0  ;;  %v317_v27 = vmax.f32 %v285_v19, 0.0  ;;  %v318_v28 = vmax.f32 %v286_v20, 0.0  ;;  %v319_v29 = vmax.f32 %v287_v21, 0.0 }
  0x22   : > { %v320_v30 = vmax.f32 %v288_v22, 0.0  ;;  %v321_v31 = vmax.f32 %v289_v23, 0.0  ;;  %v322_v32 = vmax.f32 %v290_v24, 0.0  ;;  %v323_v33 = vmax.f32 %v291_v25, 0.0 }
  0x23   : > { %v708_v34 = vpack.c.bf16 %v317_v27, %v316_v26  ;;  %v713_v35 = vpack.c.bf16 %v319_v29, %v318_v28  ;;  %v292_v36 = vadd.f32 %v903_v9, %v253_v57  ;;  %v293_v37 = vadd.f32 %v903_v9, %v254_v58 }
  0x24   : > { %v718_v38 = vpack.c.bf16 %v321_v31, %v320_v30  ;;  %v723_v39 = vpack.c.bf16 %v323_v33, %v322_v32  ;;  %v294_v40 = vadd.f32 %v903_v9, %v255_v59  ;;  %v295_v41 = vadd.f32 %v903_v9, %v256_v60 }
  0x25   : > { %709 = vst [vmem:[%s934_s25] sm:$0xff] %v708_v34   ;;  %800 = vst [vmem:[%s934_s25 + $0x8] sm:$0xff] %v713_v35   ;;  %v324_v42 = vmax.f32 %v292_v36, 0.0  ;;  %v325_v43 = vmax.f32 %v293_v37, 0.0  ;;  %v296_v44 = vadd.f32 %v903_v9, %v257_v61  ;;  %v297_v45 = vadd.f32 %v903_v9, %v258_v62 }
  0x26   : > { %801 = vst [vmem:[%s934_s25 + $0x10] sm:$0xff] %v718_v38   ;;  %802 = vst [vmem:[%s934_s25 + $0x18] sm:$0xff] %v723_v39   ;;  %v326_v46 = vmax.f32 %v294_v40, 0.0  ;;  %v327_v47 = vmax.f32 %v295_v41, 0.0  ;;  %v298_v48 = vadd.f32 %v903_v9, %v259_v63  ;;  %v299_v49 = vadd.f32 %v903_v9, %v260_v0 }
  0x27   : > { %v728_v50 = vpack.c.bf16 %v325_v43, %v324_v42  ;;  %v328_v51 = vmax.f32 %v296_v44, 0.0  ;;  %v329_v52 = vmax.f32 %v297_v45, 0.0  ;;  %v300_v53 = vadd.f32 %v903_v9, %v261_v1 }
  0x28   : > { %v733_v54 = vpack.c.bf16 %v327_v47, %v326_v46  ;;  %v330_v55 = vmax.f32 %v298_v48, 0.0  ;;  %v331_v56 = vmax.f32 %v299_v49, 0.0  ;;  %v301_v57 = vadd.f32 %v903_v9, %v262_v2 }
  0x29   : > { %803 = vst [vmem:[%s934_s25 + $0x20] sm:$0xff] %v728_v50   ;;  %v738_v58 = vpack.c.bf16 %v329_v52, %v328_v51  ;;  %v332_v59 = vmax.f32 %v300_v53, 0.0  ;;  %v302_v60 = vadd.f32 %v903_v9, %v888_v7  ;;  %v303_v61 = vadd.f32 %v903_v9, %v890_v3 }
  0x2a   : > { %804 = vst [vmem:[%s934_s25 + $0x28] sm:$0xff] %v733_v54   ;;  %v743_v62 = vpack.c.bf16 %v331_v56, %v330_v55  ;;  %v333_v63 = vmax.f32 %v301_v57, 0.0  ;;  %v304_v0 = vadd.f32 %v903_v9, %v892_v4  ;;  %v305_v1 = vadd.f32 %v903_v9, %v894_v5 }
  0x2b   : > { %805 = vst [vmem:[%s934_s25 + $0x30] sm:$0xff] %v738_v58   ;;  %v334_v2 = vmax.f32 %v302_v60, 0.0  ;;  %v335_v18 = vmax.f32 %v303_v61, 0.0  ;;  %v306_v19 = vadd.f32 %v903_v9, %v896_v6  ;;  %v307_v7 = vadd.f32 %v903_v9, %v898_v8 }
  0x2c   : > { %806 = vst [vmem:[%s934_s25 + $0x38] sm:$0xff] %v743_v62   ;;  %v748_v3 = vpack.c.bf16 %v333_v63, %v332_v59  ;;  %v336_v20 = vmax.f32 %v304_v0, 0.0  ;;  %v337_v21 = vmax.f32 %v305_v1, 0.0  ;;  %v308_v4 = vadd.f32 %v903_v9, %v905_v10 }
  0x2d   : > { %v753_v22 = vpack.c.bf16 %v335_v18, %v334_v2  ;;  %v338_v5 = vmax.f32 %v306_v19, 0.0  ;;  %v339_v23 = vmax.f32 %v307_v7, 0.0  ;;  %v309_v24 = vadd.f32 %v903_v9, %v907_v11 }
  0x2e   : > { %807 = vst [vmem:[%s934_s25 + $0x40] sm:$0xff] %v748_v3   ;;  %v758_v6 = vpack.c.bf16 %v337_v21, %v336_v20  ;;  %v340_v25 = vmax.f32 %v308_v4, 0.0  ;;  %v310_v8 = vadd.f32 %v903_v9, %v909_v12  ;;  %v311_v26 = vadd.f32 %v903_v9, %v911_v13 }
  0x2f   : > { %808 = vst [vmem:[%s934_s25 + $0x48] sm:$0xff] %v753_v22   ;;  %v763_v27 = vpack.c.bf16 %v339_v23, %v338_v5  ;;  %v341_v10 = vmax.f32 %v309_v24, 0.0  ;;  %v312_v28 = vadd.f32 %v903_v9, %v913_v14  ;;  %v313_v11 = vadd.f32 %v903_v9, %v915_v15 }
  0x30   : > { %809 = vst [vmem:[%s934_s25 + $0x50] sm:$0xff] %v758_v6   ;;  %v342_v29 = vmax.f32 %v310_v8, 0.0  ;;  %v343_v30 = vmax.f32 %v311_v26, 0.0  ;;  %v314_v12 = vadd.f32 %v903_v9, %v917_v16  ;;  %v315_v13 = vadd.f32 %v903_v9, %v919_v17 }
  0x31   : > { %810 = vst [vmem:[%s934_s25 + $0x58] sm:$0xff] %v763_v27   ;;  %v768_v31 = vpack.c.bf16 %v341_v10, %v340_v25  ;;  %v344_v32 = vmax.f32 %v312_v28, 0.0  ;;  %v345_v33 = vmax.f32 %v313_v11, 0.0 }
  0x32   : > { %v773_v14 = vpack.c.bf16 %v343_v30, %v342_v29  ;;  %v346_v34 = vmax.f32 %v314_v12, 0.0  ;;  %v347_v35 = vmax.f32 %v315_v13, 0.0 }
  0x33   : > { %811 = vst [vmem:[%s934_s25 + $0x60] sm:$0xff] %v768_v31   ;;  %v778_v15 = vpack.c.bf16 %v345_v33, %v344_v32 }
  0x34   : > { %812 = vst [vmem:[%s934_s25 + $0x68] sm:$0xff] %v773_v14   ;;  %v783_v36 = vpack.c.bf16 %v347_v35, %v346_v34 }
  0x35   : > { %813 = vst [vmem:[%s934_s25 + $0x70] sm:$0xff] %v778_v15  }
  0x36   : > { %814 = vst [vmem:[%s934_s25 + $0x78] sm:$0xff] %v783_v36  }
  0x37 PF: > { %s13_s12 = sadd.s32 1, %s829_s12  }
  0x38   : > { %p10_p4 = scmp.ge.s32.totalorder %s13_s12, 4  }
  0x3a   :  { %12 = sbr.rel (!%p10_p4) target bundleno = 1 (0x1), region = 62 }

// kernel: decoder_block.4
= control target key start
LH: loop header
LB: loop body
LE: loop exit
PB: predicated region body
PF: predicated region fallthrough
CT: control target
= control target key end

     0   :  { %s1512_s12 = smov 0   ;;  %s2115_s0 = inlined_call_operand.vmem [shape: bf16[512,72], index: 0, kind: input, shape index: {}]   ;;  %s2116_s1 = inlined_call_operand.vmem [shape: bf16[72,128], index: 1, kind: input, shape index: {}]   ;;  %s2117_s2 = inlined_call_operand.vmem [shape: bf16[512,128], index: 2, kind: output, shape index: {0}]   ;;  %s2118_s3 = inlined_call_operand.vmem [shape: f32[2,2,128], index: 3, kind: output, shape index: {1}]  }
   0x1 LB: > { %s1518_s13 = sadd.s32 4294967295, %s1490_s12   ;;  %p1173_p0 = scmp.ge.s32.totalorder %s1490_s12, 1  ;;  %s1490_s12 = sphi %s1512_s12, %s14_s12  }
   0x2   : > { %p141_p1 = scmp.lt.s32.totalorder %s1490_s12, 3 }
   0x4   : > { %p142_p2 = pnand %p1173_p0, %p141_p1 }
   0x6   : > { %145 = sbr.rel (%p142_p2) target bundleno = 390 (0x186), region = 28 }
   0xb   : > { %v1461_v0 = vld [vmem:[%s2116_s1 + $0x20] ss:$0 sps:$4 sm:$0xff]   ;;  %vm383_vm0 = vcmask 1043456   ;;  %v1462_v1 = vld [vmem:[%s2116_s1 + $0x18] sm:$0xff]   ;;  %s1174_s18 = sshll.u32 %s1518_s13, 5  ;;  %v1463_v3 = vld [vmem:[%s2116_s1 + $0x10] sm:$0xff]   ;;  %v708_v22 = vlaneseq }
   0xc   : > { %1451 = vmatprep.subr.msk.bf16.mxu0 %vm383_vm0, %v1461_v0  ;;  %v385_v2 = vsel %vm383_vm0, %v1461_v0, 0  ;;  %1452 = vmatprep.subr.msk.bf16.mxu1 %vm383_vm0, %v1461_v0  ;;  %p170_p3 = scmp.lt.s32.totalorder %s1174_s18, 63  ;;  %v1464_v4 = vld [vmem:[%s2116_s1 + $0x8] sm:$0xff]   ;;  %vm334_vm1 = vcmask 588800   ;;  %v1465_v6 = vld [vmem:[%s2116_s1] sm:$0xff]   ;;  %s1248_s29 = sshll.u32 %s1518_s13, 8 }
   0xd   : > { %1400 = vmatpush3.bf16.msra.mxu0 %v385_v2  ;;  %1446 = vmatpush3.bf16.msra.mxu1 %v385_v2  ;;  %v1580_v23 = vshrl.u32 %v708_v22, 7  ;;  %v1587_v26 = vstv %s1248_s29  ;;  %s807_s6 = ssub.s32 512, %s1248_s29  ;;  %p181_p5 = scmp.lt.s32.totalorder %s1518_s13, 1 }
   0xe   : > { %1401 = vmatprep.subr.bf16.mxu0 %v1462_v1  ;;  %1442 = vmatprep.subr.bf16.mxu1 %v1462_v1  ;;  %s2191_s18 = smov (!%p170_p3, %s1174_s18), 63  ;;  %p808_p4 = scmp.lt.s32.totalorder %s807_s6, 256 }
   0xf   : > { %s1175_s23 = sshll.u32 %s2191_s18, 2  ;;  %v710_v24 = vadd.s32 8, %v1580_v23  ;;  %v711_v25 = vadd.s32 16, %v1580_v23  ;;  %v1593_v28 = vadd.s32 %v1587_v26, %v1580_v23  ;;  %v712_v29 = vadd.s32 24, %v1580_v23  ;;  %s2195_s13 = smov (!%p181_p5, %s1518_s13), 1 }
  0x10   : > { %s1543_s26 = scalar_lea.vmem %s2115_s0, %s1175_s23  ;;  %v713_v34 = vadd.s32 32, %v1580_v23  ;;  %s1615_s5 = scalar_lea.vmem %s2117_s2, %s1175_s23  ;;  %v714_v38 = vadd.s32 40, %v1580_v23  ;;  %v715_v43 = vadd.s32 48, %v1580_v23  ;;  %v716_v52 = vadd.s32 56, %v1580_v23 }
  0x11   : > { %1402 = vmatpush3.bf16.msra.mxu0 %v1462_v1  ;;  %1447 = vmatpush3.bf16.msra.mxu1 %v1462_v1  ;;  %v1466_v5 = vld [vmem:[%s1543_s26] sm:$0xff]   ;;  %v1467_v7 = vld [vmem:[%s1543_s26 + $0x8] sm:$0xff]   ;;  %v1468_v8 = vld [vmem:[%s1543_s26 + $0x10] sm:$0xff]   ;;  %v1597_v30 = vadd.s32 %v1587_v26, %v710_v24  ;;  %v1602_v32 = vadd.s32 %v1587_v26, %v711_v25  ;;  %vm775_vm2 = vcmp.lt.s32.totalorder %v1593_v28, 512  ;;  %v1620_v37 = vadd.s32 %v1587_v26, %v712_v29  ;;  %s2193_s6 = smov (!%p808_p4, %s807_s6), 256  ;;  %s1178_s8 = sshll.u32 %s2195_s13, 1 }
  0x12   : > { %1403 = vmatprep.subr.bf16.mxu0 %v1463_v3  ;;  %1443 = vmatprep.subr.bf16.mxu1 %v1463_v3  ;;  %v1474_v9 = vld [vmem:[%s1543_s26 + $0x40] sm:$0xff]   ;;  %v1475_v10 = vld [vmem:[%s1543_s26 + $0x48] sm:$0xff]   ;;  %v1476_v11 = vld [vmem:[%s1543_s26 + $0x50] sm:$0xff]   ;;  %v1635_v44 = vadd.s32 %v1587_v26, %v713_v34  ;;  %v1656_v53 = vadd.s32 %v1587_v26, %v714_v38  ;;  %v1666_v57 = vadd.s32 %v1587_v26, %v715_v43  ;;  %v717_v59 = vadd.s32 64, %v1580_v23  ;;  %s810_s7 = scvt.s32.f32 %s2193_s6  ;;  %s1969_s11 = scalar_lea.vmem %s2118_s3, %s1178_s8 }
  0x13   : > { %1409 = vmatprep.mubr.msk.bf16.mxu0 %vm334_vm1, %v1466_v5  ;;  %1425 = vmatprep.mubr.msk.bf16.mxu1 %vm334_vm1, %v1474_v9  ;;  %v1469_v12 = vld [vmem:[%s1543_s26 + $0x18] sm:$0xff]   ;;  %v1470_v14 = vld [vmem:[%s1543_s26 + $0x20] sm:$0xff]   ;;  %v1471_v16 = vld [vmem:[%s1543_s26 + $0x28] sm:$0xff]   ;;  %vm776_vm3 = vcmp.lt.s32.totalorder %v1597_v30, 512  ;;  %vm777_vm4 = vcmp.lt.s32.totalorder %v1602_v32, 512  ;;  %vm778_vm5 = vcmp.lt.s32.totalorder %v1620_v37, 512  ;;  %v1680_v0 = vadd.s32 %v1587_v26, %v716_v52 }
  0x14   : > { %v1477_v13 = vld [vmem:[%s1543_s26 + $0x58] sm:$0xff]   ;;  %v1478_v15 = vld [vmem:[%s1543_s26 + $0x60] sm:$0xff]   ;;  %v1479_v17 = vld [vmem:[%s1543_s26 + $0x68] sm:$0xff]   ;;  %vm779_vm6 = vcmp.lt.s32.totalorder %v1635_v44, 512  ;;  %vm780_vm7 = vcmp.lt.s32.totalorder %v1656_v53, 512  ;;  %v718_v1 = vadd.s32 72, %v1580_v23  ;;  %v1698_v9 = vadd.s32 %v1587_v26, %v717_v59 }
  0x15   : > { %1404 = vmatpush3.bf16.msra.mxu0 %v1463_v3  ;;  %1448 = vmatpush3.bf16.msra.mxu1 %v1463_v3  ;;  %v1472_v18 = vld [vmem:[%s1543_s26 + $0x30] sm:$0xff]   ;;  %v1473_v20 = vld [vmem:[%s1543_s26 + $0x38] sm:$0xff]   ;;  %vm781_vm8 = vcmp.lt.s32.totalorder %v1666_v57, 512  ;;  %vm782_vm9 = vcmp.lt.s32.totalorder %v1680_v0, 512  ;;  %v721_v24 = vadd.s32 96, %v1580_v23  ;;  %v723_v52 = vadd.s32 112, %v1580_v23 }
  0x16   : > { %1405 = vmatprep.subr.bf16.mxu0 %v1464_v4  ;;  %1444 = vmatprep.subr.bf16.mxu1 %v1464_v4  ;;  %v1480_v19 = vld [vmem:[%s1543_s26 + $0x70] sm:$0xff]   ;;  %v1481_v21 = vld [vmem:[%s1543_s26 + $0x78] sm:$0xff]   ;;  %vm783_vm10 = vcmp.lt.s32.totalorder %v1698_v9, 512 }
  0x19   : > { %1406 = vmatpush3.bf16.msra.mxu0 %v1464_v4  ;;  %1449 = vmatpush3.bf16.msra.mxu1 %v1464_v4 }
  0x1a   : > { %1407 = vmatprep.subr.bf16.mxu0 %v1465_v6  ;;  %1445 = vmatprep.subr.bf16.mxu1 %v1465_v6 }
  0x1d   : > { %1408 = vmatpush3.bf16.msra.mxu0 %v1465_v6  ;;  %1450 = vmatpush3.bf16.msra.mxu1 %v1465_v6 }
  0x20   : > { %1410 = vmatmul.mubr.msk.bf16.vlgmr.msra.gmra.mxu0 %vm334_vm1, %v1467_v7  ;;  %1426 = vmatmul.mubr.msk.bf16.vlgmr.msra.gmra.mxu1 %vm334_vm1, %v1475_v10 }
  0x21   : > { %1413 = vmatprep.mubr.msk.bf16.mxu0 %vm334_vm1, %v1468_v8  ;;  %1429 = vmatprep.mubr.msk.bf16.mxu1 %vm334_vm1, %v1476_v11  ;;  %v719_v8 = vadd.s32 80, %v1580_v23 }
  0x28   : > { %1414 = vmatmul.mubr.msk.bf16.gmra.mxu0 %vm334_vm1, %v1469_v12  ;;  %1430 = vmatmul.mubr.msk.bf16.gmra.mxu1 %vm334_vm1, %v1477_v13 }
  0x29   : > { %1417 = vmatprep.mubr.msk.bf16.mxu0 %vm334_vm1, %v1470_v14  ;;  %1433 = vmatprep.mubr.msk.bf16.mxu1 %vm334_vm1, %v1478_v15 }
  0x30   : > { %1418 = vmatmul.mubr.msk.bf16.gmra.mxu0 %vm334_vm1, %v1471_v16  ;;  %1434 = vmatmul.mubr.msk.bf16.gmra.mxu1 %vm334_vm1, %v1479_v17  ;;  %v720_v16 = vadd.s32 88, %v1580_v23  ;;  %v1716_v17 = vadd.s32 %v1587_v26, %v718_v1 }
  0x31   : > { %1421 = vmatprep.mubr.msk.bf16.mxu0 %vm334_vm1, %v1472_v18  ;;  %1437 = vmatprep.mubr.msk.bf16.mxu1 %vm334_vm1, %v1480_v19 }
  0x32   : > { %vm784_vm11 = vcmp.lt.s32.totalorder %v1716_v17, 512 }
  0x38   : > { %1422 = vmatmul.mubr.msk.bf16.gmra.mxu0 %vm334_vm1, %v1473_v20  ;;  %1438 = vmatmul.mubr.msk.bf16.gmra.mxu1 %vm334_vm1, %v1481_v21  ;;  %v1726_v21 = vadd.s32 %v1587_v26, %v719_v8 }
  0x3a   : > { %vm785_vm12 = vcmp.lt.s32.totalorder %v1726_v21, 512 }
  0xe0   : > { %v1589_v27 = vpop.f32.mrf.mxu0  ;;  %v1599_v31 = vpop.f32.mrf.mxu1 }
  0xe1   : > { %v877_v55 = vsel %vm777_vm4, %v1589_v27, 0.0 }
  0xe2   : > { %v1604_v33 = vpop.f32.mrf.mxu0  ;;  %v1607_v35 = vpop.f32.mrf.mxu1 }
  0xe3   : > { %v875_v46 = vsel %vm775_vm2, %v1604_v33, 0.0 }
  0xe4   : > { %v1617_v36 = vpop.f32.mrf.mxu0  ;;  %v1624_v39 = vpop.f32.mrf.mxu1 }
  0xe5   : > { %v1291_v40 = vpack.c.bf16 %v1617_v36, %v1589_v27  ;;  %v1331_v41 = vpack.c.bf16 %v1624_v39, %v1599_v31  ;;  %v878_v61 = vsel %vm778_vm5, %v1617_v36, 0.0 }
  0xe6   : > { %v1631_v42 = vpop.f32.mrf.mxu0  ;;  %v1637_v45 = vpop.f32.mrf.mxu1 }
  0xe7   : > { %1363 = vst [vmem:[%s1615_s5 + $0x8] sm:$0xff] %v1291_v40   ;;  %v1286_v47 = vpack.c.bf16 %v1631_v42, %v1604_v33  ;;  %v876_v48 = vsel %vm776_vm3, %v1631_v42, 0.0  ;;  %1371 = vst [vmem:[%s1615_s5 + $0x48] sm:$0xff] %v1331_v41   ;;  %v1326_v49 = vpack.c.bf16 %v1637_v45, %v1607_v35  ;;  %v1740_v40 = vadd.s32 %v1587_v26, %v720_v16 }
  0xe8   : > { %v907_v50 = vadd.f32 %v876_v48, %v875_v46  ;;  %v1652_v51 = vpop.f32.mrf.mxu0  ;;  %v1658_v54 = vpop.f32.mrf.mxu1  ;;  %v722_v41 = vadd.s32 104, %v1580_v23 }
  0xe9   : > { %1287 = vst [vmem:[%s1615_s5] sm:$0xff] %v1286_v47   ;;  %1370 = vst [vmem:[%s1615_s5 + $0x40] sm:$0xff] %v1326_v49   ;;  %v881_v19 = vsel %vm781_vm8, %v1652_v51, 0.0  ;;  %vm2121_vm13 = vcmp.lt.s32.totalorder %v1740_v40, 512 }
  0xea   : > { %v908_v56 = vadd.f32 %v907_v50, %v877_v55  ;;  %v1668_v58 = vpop.f32.mrf.mxu0  ;;  %v1672_v60 = vpop.f32.mrf.mxu1  ;;  %v1758_v55 = vadd.s32 %v1587_v26, %v721_v24 }
  0xeb   : > { %v879_v3 = vsel %vm779_vm6, %v1668_v58, 0.0 }
  0xec   : > { %v909_v62 = vadd.f32 %v908_v56, %v878_v61  ;;  %v1677_v63 = vpop.f32.mrf.mxu0  ;;  %v1684_v2 = vpop.f32.mrf.mxu1  ;;  %vm2119_vm14 = vcmp.lt.s32.totalorder %v1758_v55, 512 }
  0xed   : > { %v1301_v4 = vpack.c.bf16 %v1677_v63, %v1652_v51  ;;  %v1341_v5 = vpack.c.bf16 %v1684_v2, %v1658_v54  ;;  %v882_v29 = vsel %vm782_vm9, %v1677_v63, 0.0 }
  0xee   : > { %v910_v6 = vadd.f32 %v909_v62, %v879_v3  ;;  %v1694_v7 = vpop.f32.mrf.mxu0  ;;  %v1700_v10 = vpop.f32.mrf.mxu1 }
  0xef   : > { %1365 = vst [vmem:[%s1615_s5 + $0x18] sm:$0xff] %v1301_v4   ;;  %v1296_v11 = vpack.c.bf16 %v1694_v7, %v1668_v58  ;;  %v880_v12 = vsel %vm780_vm7, %v1694_v7, 0.0  ;;  %1373 = vst [vmem:[%s1615_s5 + $0x58] sm:$0xff] %v1341_v5   ;;  %v1336_v13 = vpack.c.bf16 %v1700_v10, %v1672_v60  ;;  %v724_v4 = vadd.s32 120, %v1580_v23 }
  0xf0   : > { %v911_v14 = vadd.f32 %v910_v6, %v880_v12  ;;  %v1712_v15 = vpop.f32.mrf.mxu0  ;;  %v1718_v18 = vpop.f32.mrf.mxu1  ;;  %v1776_v5 = vadd.s32 %v1587_v26, %v722_v41  ;;  %v1786_v12 = vadd.s32 %v1587_v26, %v723_v52  ;;  %v727_v52 = vadd.s32 144, %v1580_v23 }
  0xf1   : > { %1364 = vst [vmem:[%s1615_s5 + $0x10] sm:$0xff] %v1296_v11   ;;  %1372 = vst [vmem:[%s1615_s5 + $0x50] sm:$0xff] %v1336_v13   ;;  %v885_v8 = vsel %vm785_vm12, %v1712_v15, 0.0 }
  0xf2   : > { %v912_v20 = vadd.f32 %v911_v14, %v881_v19  ;;  %v1728_v22 = vpop.f32.mrf.mxu0  ;;  %v1732_v25 = vpop.f32.mrf.mxu1  ;;  %v725_v14 = vadd.s32 128, %v1580_v23  ;;  %vm788_vm15 = vcmp.lt.s32.totalorder %v1776_v5, 512  ;;  %vm2120_vm0 = vcmp.lt.s32.totalorder %v1786_v12, 512 }
  0xf3   : > { %v883_v46 = vsel %vm783_vm10, %v1728_v22, 0.0 }
  0xf4   : > { %v913_v34 = vadd.f32 %v912_v20, %v882_v29  ;;  %v1737_v38 = vpop.f32.mrf.mxu0  ;;  %v1744_v43 = vpop.f32.mrf.mxu1  ;;  %v1800_v29 = vadd.s32 %v1587_v26, %v724_v4 }
  0xf5   : > { %v1311_v47 = vpack.c.bf16 %v1737_v38, %v1712_v15  ;;  %v1351_v48 = vpack.c.bf16 %v1744_v43, %v1718_v18  ;;  %v886_v19 = vsel %vm2121_vm13, %v1737_v38, 0.0 }
  0xf6   : > { %v914_v49 = vadd.f32 %v913_v34, %v883_v46  ;;  %v1754_v50 = vpop.f32.mrf.mxu0  ;;  %v1760_v56 = vpop.f32.mrf.mxu1  ;;  %v726_v34 = vadd.s32 136, %v1580_v23  ;;  %vm2122_vm1 = vcmp.lt.s32.totalorder %v1800_v29, 512 }
  0xf7   : > { %1367 = vst [vmem:[%s1615_s5 + $0x28] sm:$0xff] %v1311_v47   ;;  %v1306_v59 = vpack.c.bf16 %v1754_v50, %v1728_v22  ;;  %v884_v61 = vsel %vm784_vm11, %v1754_v50, 0.0  ;;  %1375 = vst [vmem:[%s1615_s5 + $0x68] sm:$0xff] %v1351_v48   ;;  %v1346_v62 = vpack.c.bf16 %v1760_v56, %v1732_v25 }
  0xf8   : > { %v915_v1 = vadd.f32 %v914_v49, %v884_v61  ;;  %v1772_v3 = vpop.f32.mrf.mxu0  ;;  %v1778_v6 = vpop.f32.mrf.mxu1 }
  0xf9   : > { %1366 = vst [vmem:[%s1615_s5 + $0x20] sm:$0xff] %v1306_v59   ;;  %1374 = vst [vmem:[%s1615_s5 + $0x60] sm:$0xff] %v1346_v62   ;;  %v1816_v59 = vadd.s32 %v1587_v26, %v725_v14  ;;  %v728_v14 = vadd.s32 152, %v1580_v23 }
  0xfa   : > { %v916_v11 = vadd.f32 %v915_v1, %v885_v8  ;;  %v1788_v13 = vpop.f32.mrf.mxu0  ;;  %v1792_v16 = vpop.f32.mrf.mxu1 }
  0xfb   : > { %v887_v46 = vsel %vm2119_vm14, %v1788_v13, 0.0  ;;  %2148 = vst [vmem:[#allocation2_spill] sm:$0xff] %v1816_v59  ;;  %vm2124_vm14 = vcmp.lt.s32.totalorder %v1816_v59, 512 }
  0xfc   : > { %v917_v20 = vadd.f32 %v916_v11, %v886_v19  ;;  %v1797_v24 = vpop.f32.mrf.mxu0  ;;  %v1804_v41 = vpop.f32.mrf.mxu1  ;;  %v1834_v19 = vadd.s32 %v1587_v26, %v726_v34 }
  0xfd   : > { %v1321_v47 = vpack.c.bf16 %v1797_v24, %v1772_v3  ;;  %v1361_v48 = vpack.c.bf16 %v1804_v41, %v1778_v6 }
  0xfe   : > { %v918_v49 = vadd.f32 %v917_v20, %v887_v46  ;;  %v1818_v61 = vpop.f32.mrf.mxu0  ;;  %v1820_v62 = vpop.f32.mrf.mxu1  ;;  %2149 = vst [vmem:[#allocation3_spill] sm:$0xff] %v1834_v19  ;;  %v889_v20 = vsel %vm2120_vm0, %v1772_v3, 0.0  ;;  %v1842_v46 = vadd.s32 %v1587_v26, %v727_v52  ;;  %vm2126_vm0 = vcmp.lt.s32.totalorder %v1834_v19, 512 }
  0xff   : > { %1369 = vst [vmem:[%s1615_s5 + $0x38] sm:$0xff] %v1321_v47   ;;  %v1316_v1 = vpack.c.bf16 %v1818_v61, %v1788_v13  ;;  %v888_v4 = vsel %vm788_vm15, %v1818_v61, 0.0  ;;  %1377 = vst [vmem:[%s1615_s5 + $0x78] sm:$0xff] %v1361_v48   ;;  %v1356_v8 = vpack.c.bf16 %v1820_v62, %v1792_v16  ;;  %v729_v48 = vadd.s32 160, %v1580_v23 }
 0x100   : > { %v919_v11 = vadd.f32 %v918_v49, %v888_v4  ;;  %2150 = vst [vmem:[#allocation4_spill] sm:$0xff] %v1842_v46  ;;  %v890_v49 = vsel %vm2122_vm1, %v1797_v24, 0.0  ;;  %v1850_v4 = vadd.s32 %v1587_v26, %v728_v14  ;;  %v891_v52 = vsel %vm2124_vm14, %v1607_v35, 0.0 }
 0x101   : > { %1368 = vst [vmem:[%s1615_s5 + $0x30] sm:$0xff] %v1316_v1   ;;  %1376 = vst [vmem:[%s1615_s5 + $0x70] sm:$0xff] %v1356_v8   ;;  %v730_v1 = vadd.s32 168, %v1580_v23  ;;  %vm2127_vm13 = vcmp.lt.s32.totalorder %v1842_v46, 512  ;;  %v892_v14 = vsel %vm2126_vm0, %v1637_v45, 0.0  ;;  %v733_v19 = vadd.s32 192, %v1580_v23 }
 0x102   : > { %v920_v47 = vadd.f32 %v919_v11, %v889_v20  ;;  %2151 = vst [vmem:[#allocation5_spill] sm:$0xff] %v1850_v4  ;;  %v731_v11 = vadd.s32 176, %v1580_v23  ;;  %v1860_v20 = vadd.s32 %v1587_v26, %v729_v48  ;;  %vm2130_vm1 = vcmp.lt.s32.totalorder %v1850_v4, 512 }
 0x103   : > { %v1868_v59 = vadd.s32 %v1587_v26, %v730_v1  ;;  %v735_v46 = vadd.s32 208, %v1580_v23  ;;  %v1892_v4 = vadd.s32 %v1587_v26, %v733_v19 }
 0x104   : > { %v921_v34 = vadd.f32 %v920_v47, %v890_v49  ;;  %2152 = vst [vmem:[#allocation6_spill] sm:$0xff] %v1860_v20  ;;  %v732_v49 = vadd.s32 184, %v1580_v23  ;;  %v1874_v48 = vadd.s32 %v1587_v26, %v731_v11  ;;  %vm2134_vm14 = vcmp.lt.s32.totalorder %v1860_v20, 512 }
 0x105   : > { %2153 = vst [vmem:[#allocation7_spill] sm:$0xff] %v1868_v59  ;;  %vm2132_vm0 = vcmp.lt.s32.totalorder %v1868_v59, 512  ;;  %v895_v11 = vsel %vm2134_vm14, %v1672_v60, 0.0  ;;  %2156 = vst [vmem:[#allocation10_spill] sm:$0xff] %v1892_v4  ;;  %v737_v59 = vadd.s32 224, %v1580_v23 }
 0x106   : > { %v922_v8 = vadd.f32 %v921_v34, %v891_v52  ;;  %v893_v34 = vsel %vm2127_vm13, %v1599_v31, 0.0  ;;  %2154 = vst [vmem:[#allocation8_spill] sm:$0xff] %v1874_v48  ;;  %v1882_v1 = vadd.s32 %v1587_v26, %v732_v49  ;;  %vm2135_vm13 = vcmp.lt.s32.totalorder %v1874_v48, 512 }
 0x107   : > { %v896_v49 = vsel %vm2132_vm0, %v1700_v10, 0.0  ;;  %vm2140_vm0 = vcmp.lt.s32.totalorder %v1892_v4, 512  ;;  %v739_v48 = vadd.s32 240, %v1580_v23 }
 0x108   : > { %v923_v47 = vadd.f32 %v922_v8, %v892_v14  ;;  %v894_v8 = vsel %vm2130_vm1, %v1624_v39, 0.0  ;;  %2155 = vst [vmem:[#allocation9_spill] sm:$0xff] %v1882_v1  ;;  %vm2138_vm1 = vcmp.lt.s32.totalorder %v1882_v1, 512  ;;  %v1926_v1 = vadd.s32 %v1587_v26, %v737_v59 }
 0x109   : > { %v1940_v59 = vadd.s32 %v1587_v26, %v739_v48 }
 0x10a   : > { %v924_v52 = vadd.f32 %v923_v47, %v893_v34  ;;  %v734_v47 = vadd.s32 200, %v1580_v23  ;;  %2159 = vst [vmem:[#allocation13_spill] sm:$0xff] %v1926_v1 }
 0x10c   : > { %v925_v14 = vadd.f32 %v924_v52, %v894_v8  ;;  %v736_v8 = vadd.s32 216, %v1580_v23  ;;  %v1900_v20 = vadd.s32 %v1587_v26, %v734_v47 }
 0x10e   : > { %v926_v34 = vadd.f32 %v925_v14, %v895_v11  ;;  %2157 = vst [vmem:[#allocation11_spill] sm:$0xff] %v1900_v20  ;;  %v897_v14 = vsel %vm2135_vm13, %v1658_v54, 0.0  ;;  %v1908_v11 = vadd.s32 %v1587_v26, %v735_v46  ;;  %vm2142_vm14 = vcmp.lt.s32.totalorder %v1900_v20, 512 }
 0x10f   : > { %v899_v46 = vsel %vm2140_vm0, %v1732_v25, 0.0  ;;  %vm803_vm0 = vcmp.lt.s32.totalorder %v1926_v1, 512 }
 0x110   : > { %v927_v52 = vadd.f32 %v926_v34, %v896_v49  ;;  %v898_v34 = vsel %vm2138_vm1, %v1684_v2, 0.0  ;;  %v1916_v49 = vadd.s32 %v1587_v26, %v736_v8  ;;  %vm2143_vm13 = vcmp.lt.s32.totalorder %v1908_v11, 512 }
 0x111   : > { %v900_v8 = vsel %vm2142_vm14, %v1760_v56, 0.0  ;;  %v903_v48 = vsel %vm803_vm0, %v1792_v16, 0.0 }
 0x112   : > { %v928_v19 = vadd.f32 %v927_v52, %v897_v14  ;;  %2158 = vst [vmem:[#allocation12_spill] sm:$0xff] %v1916_v49  ;;  %v738_v52 = vadd.s32 232, %v1580_v23  ;;  %vm2144_vm1 = vcmp.lt.s32.totalorder %v1916_v49, 512 }
 0x113   : > { %v902_v20 = vsel %vm2144_vm1, %v1744_v43, 0.0 }
 0x114   : > { %v929_v47 = vadd.f32 %v928_v19, %v898_v34  ;;  %v740_v34 = vadd.s32 248, %v1580_v23  ;;  %v1934_v4 = vadd.s32 %v1587_v26, %v738_v52 }
 0x116   : > { %v930_v14 = vadd.f32 %v929_v47, %v899_v46  ;;  %2160 = vst [vmem:[#allocation14_spill] sm:$0xff] %v1934_v4  ;;  %v901_v47 = vsel %vm2143_vm13, %v1718_v18, 0.0  ;;  %v1947_v52 = vadd.s32 %v1587_v26, %v740_v34  ;;  %vm804_vm14 = vcmp.lt.s32.totalorder %v1934_v4, 512 }
 0x117   : > { %vm805_vm13 = vcmp.lt.s32.totalorder %v1940_v59, 512 }
 0x118   : > { %v931_v19 = vadd.f32 %v930_v14, %v900_v8  ;;  %v904_v8 = vsel %vm804_vm14, %v1820_v62, 0.0  ;;  %vm806_vm1 = vcmp.lt.s32.totalorder %v1947_v52, 512  ;;  %v905_v26 = vsel %vm805_vm13, %v1778_v6, 0.0 }
 0x11a   : > { %v932_v46 = vadd.f32 %v931_v19, %v901_v47  ;;  %v944_v19 = vstv %s810_s7  ;;  %v906_v47 = vsel %vm806_vm1, %v1804_v41, 0.0 }
 0x11b   : > { %1482 = vrcp.f32 %v944_v19 }
 0x11c   : > { %v933_v23 = vadd.f32 %v932_v46, %v902_v20 }
 0x11e   : > { %v934_v14 = vadd.f32 %v933_v23, %v903_v48 }
 0x120   : > { %v935_v20 = vadd.f32 %v934_v14, %v904_v8 }
 0x122   : > { %v936_v34 = vadd.f32 %v935_v20, %v905_v26 }
 0x124   : > { %v937_v46 = vadd.f32 %v936_v34, %v906_v47 }
 0x126   : > { %v938_v23 = vrot.slane %v937_v46, 4 }
 0x128   : > { %v939_v48 = vadd.f32 %v938_v23, %v937_v46  ;;  %v1483_v14 = vpop.eup %1482 }
 0x12a   : > { %v940_v4 = vrot.slane %v939_v48, 2 }
 0x12c   : > { %v941_v1 = vadd.f32 %v940_v4, %v939_v48 }
 0x12e   : > { %v942_v49 = vrot.slane %v941_v1, 1 }
 0x130   : > { %v943_v8 = vadd.f32 %v942_v49, %v941_v1 }
 0x132   : > { %v1971_v19 = vmul.f32 %v1483_v14, %v943_v8  ;;  %1080 = vst [vmem:[%s1969_s11] sm:$0x1] %v943_v8 }
 0x134   : > { %v956_v20 = vsub.f32 %v1754_v50, %v1971_v19  ;;  %v959_v26 = vsub.f32 %v1788_v13, %v1971_v19  ;;  %v960_v4 = vsub.f32 %v1818_v61, %v1971_v19  ;;  %v961_v34 = vsub.f32 %v1772_v3, %v1971_v19 }
 0x135   : > { %v962_v47 = vsub.f32 %v1797_v24, %v1971_v19  ;;  %v975_v1 = vsub.f32 %v1792_v16, %v1971_v19  ;;  %v976_v49 = vsub.f32 %v1820_v62, %v1971_v19  ;;  %v978_v50 = vsub.f32 %v1804_v41, %v1971_v19 }
 0x136   : > { %v992_v13 = vsel %vm788_vm15, %v960_v4, 0.0  ;;  %v947_v61 = vsub.f32 %v1604_v33, %v1971_v19  ;;  %v948_v3 = vsub.f32 %v1631_v42, %v1971_v19  ;;  %v949_v24 = vsub.f32 %v1589_v27, %v1971_v19 }
 0x137   : > { %v950_v48 = vsub.f32 %v1617_v36, %v1971_v19  ;;  %v951_v33 = vsub.f32 %v1668_v58, %v1971_v19  ;;  %v952_v27 = vsub.f32 %v1694_v7, %v1971_v19  ;;  %v953_v4 = vsub.f32 %v1652_v51, %v1971_v19 }
 0x138   : > { %v979_v46 = vsel %vm775_vm2, %v947_v61, 0.0  ;;  %v980_v23 = vsel %vm776_vm3, %v948_v3, 0.0  ;;  %v981_v42 = vsel %vm777_vm4, %v949_v24, 0.0  ;;  %v954_v32 = vsub.f32 %v1677_v63, %v1971_v19 }
 0x139   : > { %v1011_v5 = vmul.f32 %v979_v46, %v979_v46  ;;  %v1012_v14 = vmul.f32 %v980_v23, %v980_v23  ;;  %v982_v28 = vsel %vm778_vm5, %v950_v48, 0.0  ;;  %v1013_v8 = vmul.f32 %v981_v42, %v981_v42 }
 0x13a   : > { %v983_v36 = vsel %vm779_vm6, %v951_v33, 0.0  ;;  %v1014_v61 = vmul.f32 %v982_v28, %v982_v28  ;;  %v984_v58 = vsel %vm780_vm7, %v952_v27, 0.0  ;;  %v955_v37 = vsub.f32 %v1728_v22, %v1971_v19 }
 0x13b   : > { %v1043_v30 = vadd.f32 %v1012_v14, %v1011_v5  ;;  %v1015_v7 = vmul.f32 %v983_v36, %v983_v36  ;;  %v985_v46 = vsel %vm781_vm8, %v953_v4, 0.0  ;;  %v1016_v51 = vmul.f32 %v984_v58, %v984_v58 }
 0x13c   : > { %v986_v44 = vsel %vm782_vm9, %v954_v32, 0.0  ;;  %v1017_v48 = vmul.f32 %v985_v46, %v985_v46  ;;  %v957_v63 = vsub.f32 %v1712_v15, %v1971_v19  ;;  %v987_v53 = vsel %vm783_vm10, %v955_v37, 0.0 }
 0x13d   : > { %v1044_v3 = vadd.f32 %v1043_v30, %v1013_v8  ;;  %v1018_v14 = vmul.f32 %v986_v44, %v986_v44  ;;  %v958_v22 = vsub.f32 %v1737_v38, %v1971_v19  ;;  %v988_v57 = vsel %vm784_vm11, %v956_v20, 0.0 }
 0x13e   : > { %v1019_v42 = vmul.f32 %v987_v53, %v987_v53  ;;  %v989_v0 = vsel %vm785_vm12, %v957_v63, 0.0  ;;  %v1020_v28 = vmul.f32 %v988_v57, %v988_v57  ;;  %vm2161_vm2 = vcmp.lt.s32.totalorder %v1740_v40, 512 }
 0x13f   : > { %v1045_v24 = vadd.f32 %v1044_v3, %v1014_v61  ;;  %v990_v15 = vsel %vm2161_vm2, %v958_v22, 0.0  ;;  %v1021_v9 = vmul.f32 %v989_v0, %v989_v0  ;;  %vm2162_vm3 = vcmp.lt.s32.totalorder %v1758_v55, 512 }
 0x140   : > { %v991_v4 = vsel %vm2162_vm3, %v959_v26, 0.0  ;;  %v1022_v36 = vmul.f32 %v990_v15, %v990_v15  ;;  %v963_v20 = vsub.f32 %v1607_v35, %v1971_v19  ;;  %vm2163_vm4 = vcmp.lt.s32.totalorder %v1786_v12, 512  ;;  %v2177_v15 = vld [vmem:[#allocation8_spill] sm:$0xff] }
 0x141   : > { %v1046_v23 = vadd.f32 %v1045_v24, %v1015_v7  ;;  %v1023_v61 = vmul.f32 %v991_v4, %v991_v4  ;;  %v993_v21 = vsel %vm2163_vm4, %v961_v34, 0.0  ;;  %v1024_v3 = vmul.f32 %v992_v13, %v992_v13  ;;  %v2165_v24 = vld [vmem:[#allocation2_spill] sm:$0xff]  ;;  %v2167_v34 = vld [vmem:[#allocation3_spill] sm:$0xff] }
 0x142   : > { %v964_v40 = vsub.f32 %v1637_v45, %v1971_v19  ;;  %vm2164_vm5 = vcmp.lt.s32.totalorder %v1800_v29, 512  ;;  %v1025_v55 = vmul.f32 %v993_v21, %v993_v21  ;;  %v965_v7 = vsub.f32 %v1599_v31, %v1971_v19 }
 0x143   : > { %v1047_v5 = vadd.f32 %v1046_v23, %v1016_v51  ;;  %v994_v58 = vsel %vm2164_vm5, %v962_v47, 0.0  ;;  %vm2166_vm6 = vcmp.lt.s32.totalorder %v2165_v24, 512  ;;  %v966_v12 = vsub.f32 %v1624_v39, %v1971_v19  ;;  %v2169_v47 = vld [vmem:[#allocation4_spill] sm:$0xff] }
 0x144   : > { %v995_v37 = vsel %vm2166_vm6, %v963_v20, 0.0  ;;  %v1026_v35 = vmul.f32 %v994_v58, %v994_v58  ;;  %vm2168_vm7 = vcmp.lt.s32.totalorder %v2167_v34, 512  ;;  %v967_v29 = vsub.f32 %v1672_v60, %v1971_v19  ;;  %v2181_v20 = vld [vmem:[#allocation10_spill] sm:$0xff] }
 0x145   : > { %v1048_v33 = vadd.f32 %v1047_v5, %v1017_v48  ;;  %v996_v13 = vsel %vm2168_vm7, %v964_v40, 0.0  ;;  %v1027_v45 = vmul.f32 %v995_v37, %v995_v37  ;;  %vm2170_vm8 = vcmp.lt.s32.totalorder %v2169_v47, 512  ;;  %v2171_v5 = vld [vmem:[#allocation5_spill] sm:$0xff]  ;;  %v2183_v40 = vld [vmem:[#allocation11_spill] sm:$0xff]  ;;  %v2186_v37 = vld [vmem:[#allocation12_spill] sm:$0xff] }
 0x146   : > { %v997_v23 = vsel %vm2170_vm8, %v965_v7, 0.0  ;;  %v1028_v31 = vmul.f32 %v996_v13, %v996_v13  ;;  %v968_v48 = vsub.f32 %v1700_v10, %v1971_v19  ;;  %vm2172_vm9 = vcmp.lt.s32.totalorder %v2171_v5, 512 }
 0x147   : > { %v1049_v27 = vadd.f32 %v1048_v33, %v1018_v14  ;;  %v998_v63 = vsel %vm2172_vm9, %v966_v12, 0.0  ;;  %v1029_v39 = vmul.f32 %v997_v23, %v997_v23  ;;  %v969_v14 = vsub.f32 %v1658_v54, %v1971_v19  ;;  %v2173_v33 = vld [vmem:[#allocation6_spill] sm:$0xff] }
 0x148   : > { %vm2174_vm10 = vcmp.lt.s32.totalorder %v2173_v33, 512  ;;  %v1030_v60 = vmul.f32 %v998_v63, %v998_v63  ;;  %vm2178_vm12 = vcmp.lt.s32.totalorder %v2177_v15, 512  ;;  %v972_v4 = vsub.f32 %v1760_v56, %v1971_v19 }
 0x149   : > { %v1050_v8 = vadd.f32 %v1049_v27, %v1019_v42  ;;  %v999_v22 = vsel %vm2174_vm10, %v967_v29, 0.0  ;;  %v970_v42 = vsub.f32 %v1684_v2, %v1971_v19  ;;  %v2175_v27 = vld [vmem:[#allocation7_spill] sm:$0xff]  ;;  %vm2182_vm2 = vcmp.lt.s32.totalorder %v2181_v20, 512 }
 0x14a   : > { %vm2176_vm11 = vcmp.lt.s32.totalorder %v2175_v27, 512  ;;  %v1031_v10 = vmul.f32 %v999_v22, %v999_v22  ;;  %vm2184_vm3 = vcmp.lt.s32.totalorder %v2183_v40, 512  ;;  %vm2185_vm4 = vcmp.lt.s32.totalorder %v1908_v11, 512 }
 0x14b   : > { %v1051_v30 = vadd.f32 %v1050_v8, %v1020_v28  ;;  %v1000_v0 = vsel %vm2176_vm11, %v968_v48, 0.0  ;;  %v971_v8 = vsub.f32 %v1732_v25, %v1971_v19  ;;  %v1004_v58 = vsel %vm2184_vm3, %v972_v4, 0.0 }
 0x14c   : > { %v1032_v54 = vmul.f32 %v1000_v0, %v1000_v0  ;;  %v1036_v7 = vmul.f32 %v1004_v58, %v1004_v58  ;;  %vm2187_vm5 = vcmp.lt.s32.totalorder %v2186_v37, 512  ;;  %v977_v12 = vsub.f32 %v1778_v6, %v1971_v19 }
 0x14d   : > { %v1052_v38 = vadd.f32 %v1051_v30, %v1021_v9  ;;  %v1001_v9 = vsel %vm2178_vm12, %v969_v14, 0.0  ;;  %v1003_v21 = vsel %vm2182_vm2, %v971_v8, 0.0  ;;  %v1007_v34 = vsel %vm803_vm0, %v975_v1, 0.0 }
 0x14e   : > { %v1033_v2 = vmul.f32 %v1001_v9, %v1001_v9  ;;  %v1035_v56 = vmul.f32 %v1003_v21, %v1003_v21  ;;  %v1039_v29 = vmul.f32 %v1007_v34, %v1007_v34  ;;  %v1009_v6 = vsel %vm805_vm13, %v977_v12, 0.0 }
 0x14f   : > { %v1053_v17 = vadd.f32 %v1052_v38, %v1022_v36  ;;  %v2179_v36 = vld [vmem:[#allocation9_spill] sm:$0xff]  ;;  %v1010_v16 = vsel %vm806_vm1, %v978_v50, 0.0  ;;  %v1041_v1 = vmul.f32 %v1009_v6, %v1009_v6 }
 0x150   : > { %vm2180_vm15 = vcmp.lt.s32.totalorder %v2179_v36, 512  ;;  %v1042_v62 = vmul.f32 %v1010_v16, %v1010_v16 }
 0x151   : > { %v1054_v32 = vadd.f32 %v1053_v17, %v1023_v61  ;;  %v1002_v38 = vsel %vm2180_vm15, %v970_v42, 0.0  ;;  %v973_v17 = vsub.f32 %v1718_v18, %v1971_v19 }
 0x152   : > { %v1034_v25 = vmul.f32 %v1002_v38, %v1002_v38 }
 0x153   : > { %v1055_v26 = vadd.f32 %v1054_v32, %v1024_v3  ;;  %v974_v32 = vsub.f32 %v1744_v43, %v1971_v19 }
 0x155   : > { %v1056_v46 = vadd.f32 %v1055_v26, %v1025_v55  ;;  %v1005_v26 = vsel %vm2185_vm4, %v973_v17, 0.0  ;;  %v1006_v18 = vsel %vm2187_vm5, %v974_v32, 0.0 }
 0x156   : > { %v1038_v13 = vmul.f32 %v1006_v18, %v1006_v18 }
 0x157   : > { %v1057_v51 = vadd.f32 %v1056_v46, %v1026_v35  ;;  %v1037_v35 = vmul.f32 %v1005_v26, %v1005_v26 }
 0x159   : > { %v1058_v44 = vadd.f32 %v1057_v51, %v1027_v45  ;;  %v1008_v51 = vsel %vm804_vm14, %v976_v49, 0.0 }
 0x15a   : > { %v1040_v23 = vmul.f32 %v1008_v51, %v1008_v51 }
 0x15b   : > { %v1059_v53 = vadd.f32 %v1058_v44, %v1028_v31 }
 0x15d   : > { %v1060_v57 = vadd.f32 %v1059_v53, %v1029_v39 }
 0x15f   : > { %v1061_v28 = vadd.f32 %v1060_v57, %v1030_v60 }
 0x161   : > { %v1062_v30 = vadd.f32 %v1061_v28, %v1031_v10 }
 0x163   : > { %v1063_v61 = vadd.f32 %v1062_v30, %v1032_v54 }
 0x165   : > { %v1064_v3 = vadd.f32 %v1063_v61, %v1033_v2 }
 0x167   : > { %v1065_v55 = vadd.f32 %v1064_v3, %v1034_v25 }
 0x169   : > { %v1066_v24 = vadd.f32 %v1065_v55, %v1035_v56 }
 0x16b   : > { %v1067_v46 = vadd.f32 %v1066_v24, %v1036_v7 }
 0x16d   : > { %v1068_v45 = vadd.f32 %v1067_v46, %v1037_v35 }
 0x16f   : > { %v1069_v47 = vadd.f32 %v1068_v45, %v1038_v13 }
 0x171   : > { %v1070_v31 = vadd.f32 %v1069_v47, %v1039_v29 }
 0x173   : > { %v1071_v44 = vadd.f32 %v1070_v31, %v1040_v23 }
 0x175   : > { %v1072_v48 = vadd.f32 %v1071_v44, %v1041_v1 }
 0x177   : > { %v1073_v5 = vadd.f32 %v1072_v48, %v1042_v62 }
 0x179   : > { %v1074_v49 = vrot.slane %v1073_v5, 4 }
 0x17b   : > { %v1075_v63 = vadd.f32 %v1074_v49, %v1073_v5 }
 0x17d   : > { %v1076_v39 = vrot.slane %v1075_v63, 2 }
 0x17f   : > { %v1077_v53 = vadd.f32 %v1076_v39, %v1075_v63 }
 0x181   : > { %v1078_v59 = vrot.slane %v1077_v53, 1 }
 0x183   : > { %v1079_v14 = vadd.f32 %v1078_v59, %v1077_v53 }
 0x185   : > { %1081 = vst [vmem:[%s1969_s11 + $0x1] sm:$0x1] %v1079_v14 }
 0x186 PF: > { %s14_s12 = sadd.s32 1, %s1490_s12  }
 0x187   : > { %p11_p6 = scmp.ge.s32.totalorder %s14_s12, 4  }
 0x189   :  { %13 = sbr.rel (!%p11_p6) target bundleno = 1 (0x1), region = 70 }

</bundles_post_ra>
